<compile_context>
chip_gen: v6e
topology: v6e:2x2x1
jax: 0.10.0
libtpu: 0.0.40
codegen_flags: <defaults>
</compile_context>

<pallas_src>
import functools

import jax
import jax.numpy as jnp
from jax import lax
from jax.experimental import pallas as pl
from jax.experimental.pallas import tpu as pltpu


def _round_up(x, m):
    return ((x + m - 1) // m) * m


# ----------------------------------------------------------------------------
# TaylorKAN projection kernel:  y = bias + [x^0 | x^1 | ... | x^(order-1)] @ W_flat
# ----------------------------------------------------------------------------
def _taylor_kan_kernel(x_ref, w_ref, b_ref, o_ref, *, order):
    x = x_ref[...].astype(jnp.float32)                    # (TN, d_in)
    powers = []
    xk = jnp.ones_like(x)                                 # x^0
    for k in range(order):                                # order is small & static -> unrolled
        powers.append(xk)
        if k + 1 < order:
            xk = xk * x                                   # running power avoids pow(neg, k)
    x_aug = jnp.concatenate(powers, axis=-1) if order > 1 else powers[0]   # (TN, order*d_in)
    y = jnp.dot(x_aug, w_ref[...], preferred_element_type=jnp.float32)     # one wide-K matmul
    o_ref[...] = (y + b_ref[...]).astype(o_ref.dtype)


def taylor_kan(x2d, w_flat, b, *, row_tile=512):
    """x2d: (N, d_in); w_flat: (order*d_in, d_out); b: (1, d_out) -> (N, d_out)."""
    n, d_in = x2d.shape
    kd, d_out = w_flat.shape
    order = kd // d_in
    tn = min(row_tile, _round_up(n, 8))                   # row tile, multiple of 8
    grid = (pl.cdiv(n, tn),)
    kernel = functools.partial(_taylor_kan_kernel, order=order)
    cost = pl.CostEstimate(
        flops=2 * n * kd * d_out,
        transcendentals=0,
        bytes_accessed=4 * (n * d_in + kd * d_out + d_out + n * d_out),
    )
    return pl.pallas_call(
        kernel,
        out_shape=jax.ShapeDtypeStruct((n, d_out), x2d.dtype),
        grid=grid,
        in_specs=[
            pl.BlockSpec((tn, d_in), lambda i: (i, 0)),       # row tile (double-buffered)
            pl.BlockSpec((kd, d_out), lambda i: (0, 0)),      # weights resident in VMEM
            pl.BlockSpec((1, d_out), lambda i: (0, 0)),       # bias resident in VMEM
        ],
        out_specs=pl.BlockSpec((tn, d_out), lambda i: (i, 0)),
        compiler_params=pltpu.CompilerParams(
            dimension_semantics=("parallel",)),
        cost_estimate=cost,
    )(x2d, w_flat, b)


# ----------------------------------------------------------------------------
# FullAttention kernel (no mask, no dropout): one grid step per batch, all heads
# in-kernel, head split/merge via last-dim column slices (no transposes).
# ----------------------------------------------------------------------------
def _attention_kernel(q_ref, k_ref, v_ref, o_ref, *, n_heads, dk, dv, scale):
    q = q_ref[0]                                          # (L, H*dk)
    k = k_ref[0]                                          # (S, H*dk)
    v = v_ref[0]                                          # (S, H*dv)
    head_outs = []
    for h in range(n_heads):                              # H is small & static -> unrolled
        qh = q[:, h * dk:(h + 1) * dk]
        kh = k[:, h * dk:(h + 1) * dk]
        vh = v[:, h * dv:(h + 1) * dv]
        # q @ k^T expressed as a contraction (no materialized transpose of K).
        s = lax.dot_general(qh, kh, (((1,), (1,)), ((), ())),
                            preferred_element_type=jnp.float32) * scale    # (L, S)
        m = jnp.max(s, axis=-1, keepdims=True)
        p = jnp.exp(s - m)
        a = p * pl.reciprocal(jnp.sum(p, axis=-1, keepdims=True), approx=True)
        head_outs.append(jnp.dot(a, vh, preferred_element_type=jnp.float32))
    # single lane-dense store of all heads
    o_ref[0] = jnp.concatenate(head_outs, axis=-1).astype(o_ref.dtype)


def full_attention(q, k, v, n_heads):
    """q: (B, L, H*dk); k: (B, S, H*dk); v: (B, S, H*dv) -> (B, L, H*dv)."""
    b, l, hdk = q.shape
    s = k.shape[1]
    hdv = v.shape[2]
    dk = hdk // n_heads
    dv = hdv // n_heads
    scale = 1.0 / (dk ** 0.5)
    kernel = functools.partial(_attention_kernel, n_heads=n_heads, dk=dk, dv=dv, scale=scale)
    cost = pl.CostEstimate(
        flops=2 * b * n_heads * l * s * (dk + dv),
        transcendentals=b * n_heads * l * s,
        bytes_accessed=4 * (b * l * hdk + b * s * hdk + b * s * hdv + b * l * hdv),
    )
    return pl.pallas_call(
        kernel,
        out_shape=jax.ShapeDtypeStruct((b, l, hdv), q.dtype),
        grid=(b,),
        in_specs=[
            pl.BlockSpec((1, l, hdk), lambda bi: (bi, 0, 0)),
            pl.BlockSpec((1, s, hdk), lambda bi: (bi, 0, 0)),
            pl.BlockSpec((1, s, hdv), lambda bi: (bi, 0, 0)),
        ],
        out_specs=pl.BlockSpec((1, l, hdv), lambda bi: (bi, 0, 0)),
        compiler_params=pltpu.CompilerParams(
            dimension_semantics=("parallel",)),
        cost_estimate=cost,
    )(q, k, v)


# ----------------------------------------------------------------------------
# KANAttentionLayer forward
# ----------------------------------------------------------------------------
def kan_attention_layer(queries, keys, values, attn_mask, params, n_heads):
    """Mirrors KANAttentionLayer.forward with TaylorKAN projections + FullAttention."""
    del attn_mask  # TODO(synk): mask unused — FullAttention(mask_flag=False) as in iTransformer encoder.
    B, L, _ = queries.shape
    _, S, _ = keys.shape
    H = n_heads

    def flatten_w(w):                                     # (order, d_in, d_out) -> (order*d_in, d_out)
        order, d_in, d_out = w.shape
        return w.reshape(order * d_in, d_out)

    wq, bq = params["query"]
    wk, bk = params["key"]
    wv, bv = params["value"]
    wo, bo = params["out"]
    wq_f, wk_f, wv_f, wo_f = map(flatten_w, (wq, wk, wv, wo))
    hdk = wq_f.shape[1]                                   # H * d_keys
    hdv = wv_f.shape[1]                                   # H * d_values

    if (queries is keys) and (keys is values):
        # Self-attention: compute x^k once; one stacked wide matmul for Q|K|V.
        w_qkv = jnp.concatenate([wq_f, wk_f, wv_f], axis=-1)
        b_qkv = jnp.concatenate([bq, bk, bv], axis=-1)
        qkv = taylor_kan(queries.reshape(B * L, -1), w_qkv, b_qkv)
        q = qkv[:, :hdk].reshape(B, L, hdk)
        k = qkv[:, hdk:2 * hdk].reshape(B, S, hdk)
        v = qkv[:, 2 * hdk:].reshape(B, S, hdv)
    else:
        q = taylor_kan(queries.reshape(B * L, -1), wq_f, bq).reshape(B, L, hdk)
        k = taylor_kan(keys.reshape(B * S, -1), wk_f, bk).reshape(B, S, hdk)
        v = taylor_kan(values.reshape(B * S, -1), wv_f, bv).reshape(B, S, hdv)

    # Heads live in the last-dim column blocks (same column order as torch .view(B,L,H,-1)),
    # so no reshape/transpose round trips are needed around the attention kernel.
    o = full_attention(q, k, v, H)                        # (B, L, H*dv)

    out = taylor_kan(o.reshape(B * L, hdv), wo_f, bo).reshape(B, L, -1)
    attn = None                                           # output_attention=False
    return out, attn


# ----------------------------------------------------------------------------
# Pure-JAX reference (for correctness check)
# ----------------------------------------------------------------------------
def _taylor_kan_ref(x2d, w, b):
    order = w.shape[0]
    acc = jnp.broadcast_to(b, (x2d.shape[0], w.shape[2]))
    xk = jnp.ones_like(x2d)
    for k in range(order):
        acc = acc + xk @ w[k]
        xk = xk * x2d
    return acc


def _reference(queries, keys, values, params, n_heads):
    B, L, _ = queries.shape
    S = keys.shape[1]
    H = n_heads

    def proj(x, name):
        w, b = params[name]
        y = _taylor_kan_ref(x.reshape(-1, x.shape[-1]), w, b)
        return y.reshape(x.shape[0], x.shape[1], -1)

    q = proj(queries, "query").reshape(B, L, H, -1)
    k = proj(keys, "key").reshape(B, S, H, -1)
    v = proj(values, "value").reshape(B, S, H, -1)
    E = q.shape[-1]
    scores = jnp.einsum("blhe,bshe->bhls", q, k) / (E ** 0.5)
    a = jax.nn.softmax(scores, axis=-1)
    o = jnp.einsum("bhls,bshd->blhd", a, v).reshape(B, L, -1)
    return proj(o, "out")


# ----------------------------------------------------------------------------
def make_taylor_params(key, d_in, d_out, order):
    # TaylorKANLayer: coeffs ~ randn(out_dim, in_dim, order) * 0.01 ; bias = zeros(1, out_dim)
    coeffs = jax.random.normal(key, (d_out, d_in, order), jnp.float32) * 0.01
    w = jnp.transpose(coeffs, (2, 1, 0))                  # (order, d_in, d_out): W_k[i, o]
    b = jnp.zeros((1, d_out), jnp.float32)
    return w, b


if __name__ == "__main__":
    # Small shapes consistent with the module's forward.
    B, L, S = 2, 8, 8
    d_model, n_heads = 32, 4
    d_keys = d_values = d_model // n_heads                # 8
    order = 3                                             # kan_param for TaylorKAN

    root = jax.random.PRNGKey(0)
    kq, kk, kv, ko, kx1, kx2, kx3 = jax.random.split(root, 7)

    params = {
        "query": make_taylor_params(kq, d_model, d_keys * n_heads, order),
        "key": make_taylor_params(kk, d_model, d_keys * n_heads, order),
        "value": make_taylor_params(kv, d_model, d_values * n_heads, order),
        "out": make_taylor_params(ko, d_values * n_heads, d_model, order),
    }

    queries = jax.random.normal(kx1, (B, L, d_model), jnp.float32)
    keys = jax.random.normal(kx2, (B, S, d_model), jnp.float32)
    values = jax.random.normal(kx3, (B, S, d_model), jnp.float32)

    # 1) General (distinct q/k/v) path.
    out, attn = kan_attention_layer(queries, keys, values, None, params, n_heads)
    out = jax.block_until_ready(out)
    ref = _reference(queries, keys, values, params, n_heads)
    assert out.shape == (B, L, d_model)
    assert attn is None
    assert jnp.allclose(out, ref, atol=1e-3, rtol=1e-2), "mismatch vs pure-JAX reference"

    # 2) Self-attention path (queries is keys is values) -> fused Q|K|V projection.
    x = queries
    out2, _ = kan_attention_layer(x, x, x, None, params, n_heads)
    out2 = jax.block_until_ready(out2)
    ref2 = _reference(x, x, x, params, n_heads)
    assert jnp.allclose(out2, ref2, atol=1e-3, rtol=1e-2), "mismatch (self-attn fused path)"

    print("KERNEL_OK")
</pallas_src>

<mosaic_0001>
module attributes {stable_mosaic.version = 11 : i64} {
  func.func @_taylor_kan_kernel(%arg0: i32, %arg1: memref<16x32xf32, #tpu.memory_space<vmem>>, %arg2: memref<96x32xf32, #tpu.memory_space<vmem>>, %arg3: memref<1x32xf32, #tpu.memory_space<vmem>>, %arg4: memref<16x32xf32, #tpu.memory_space<vmem>>) attributes {dimension_semantics = [#tpu.dimension_semantics<parallel>], iteration_bounds = array<i64: 1>, scalar_prefetch = 0 : i64, scratch_operands = 0 : i64, tpu.core_type = #tpu.core_type<tc>, window_params = [{transform_indices = @transform_0, window_bounds = array<i64: 16, 32>}, {pipeline_mode = #tpu.pipeline_mode<synchronous>, transform_indices = @transform_1, window_bounds = array<i64: 96, 32>}, {pipeline_mode = #tpu.pipeline_mode<synchronous>, transform_indices = @transform_2, window_bounds = array<i64: 1, 32>}, {transform_indices = @transform_3, window_bounds = array<i64: 16, 32>}]} {
    %c0 = arith.constant 0 : index
    %c0_0 = arith.constant 0 : index
    %0 = vector.load %arg1[%c0, %c0_0] : memref<16x32xf32, #tpu.memory_space<vmem>>, vector<16x32xf32>
    %cst = arith.constant 1.000000e+00 : f32
    %1 = vector.broadcast %cst : f32 to vector<16x32xf32>
    %2 = arith.mulf %1, %0 : vector<16x32xf32>
    %3 = arith.mulf %2, %0 : vector<16x32xf32>
    %4 = tpu.concatenate %1, %2, %3 in 1 : vector<16x32xf32>, vector<16x32xf32>, vector<16x32xf32> -> vector<16x96xf32>
    %c0_1 = arith.constant 0 : index
    %c0_2 = arith.constant 0 : index
    %5 = vector.load %arg2[%c0_1, %c0_2] : memref<96x32xf32, #tpu.memory_space<vmem>>, vector<96x32xf32>
    %cst_3 = arith.constant dense<0.000000e+00> : vector<16x32xf32>
    %6 = tpu.matmul %4, %5, %cst_3 {dimension_numbers = #tpu.dot_dimension_numbers<[1], [0], [0], [1], [0, 0, 1, 1], [], []>} : vector<16x96xf32>, vector<96x32xf32>, vector<16x32xf32> -> vector<16x32xf32>
    %c0_4 = arith.constant 0 : index
    %c0_5 = arith.constant 0 : index
    %7 = vector.load %arg3[%c0_4, %c0_5] : memref<1x32xf32, #tpu.memory_space<vmem>>, vector<1x32xf32>
    %8 = vector.broadcast %7 : vector<1x32xf32> to vector<16x32xf32>
    %9 = arith.addf %6, %8 : vector<16x32xf32>
    %c0_6 = arith.constant 0 : index
    %c0_7 = arith.constant 0 : index
    %10 = vector.load %arg4[%c0_6, %c0_7] : memref<16x32xf32, #tpu.memory_space<vmem>>, vector<16x32xf32>
    tpu.vector_store %arg4[%c0_6, %c0_7], %9 {strides = array<i32>} : memref<16x32xf32, #tpu.memory_space<vmem>>, vector<16x32xf32>,
    return
  }
  func.func @transform_0(%arg0: i32) -> (i32, i32) {
    %c0_i32 = arith.constant 0 : i32
    %c0_i32_0 = arith.constant 0 : i32
    return %arg0, %c0_i32 : i32, i32
  }
  func.func @transform_1(%arg0: i32) -> (i32, i32) {
    %c0_i32 = arith.constant 0 : i32
    %c0_i32_0 = arith.constant 0 : i32
    %c0_i32_1 = arith.constant 0 : i32
    return %c0_i32, %c0_i32_0 : i32, i32
  }
  func.func @transform_2(%arg0: i32) -> (i32, i32) {
    %c0_i32 = arith.constant 0 : i32
    %c0_i32_0 = arith.constant 0 : i32
    %c0_i32_1 = arith.constant 0 : i32
    return %c0_i32, %c0_i32_0 : i32, i32
  }
  func.func @transform_3(%arg0: i32) -> (i32, i32) {
    %c0_i32 = arith.constant 0 : i32
    %c0_i32_0 = arith.constant 0 : i32
    return %arg0, %c0_i32 : i32, i32
  }
}

</mosaic_0001>

<bundles_post_ra>
// kernel: tpu_custom_call.1
= control target key start
LH: loop header
LB: loop body
LE: loop exit
PB: predicated region body
PF: predicated region fallthrough
CT: control target
= control target key end

     0   :  { %s231_s18 = smov 32   ;;  %s232_s23 = smov 64   ;;  %s308_s0 = inlined_call_operand.vmem [shape: f32[16,32], index: 0, kind: input, shape index: {}]   ;;  %s309_s1 = inlined_call_operand.vmem [shape: f32[96,32], index: 1, kind: input, shape index: {}]   ;;  %s310_s2 = inlined_call_operand.vmem [shape: f32[1,32], index: 2, kind: input, shape index: {}]   ;;  %s311_s3 = inlined_call_operand.hbm [shape: f32[16,32], index: 3, kind: output, shape index: {}]  }
   0x1   :  { %v15_v0 = vld [vmem:[%s308_s0] sm:$0xff]  ;;  %v16_v1 = vld [vmem:[%s308_s0 + $0x8] sm:$0xff]  ;;  %v52_v2 = vld [vmem:[%s309_s1 + $0x58] sm:$0xff] }
   0x2   :  { %21 = vrot.lane.b32.xlu0 %v15_v0, %s231_s18  ;;  %v17_v3 = vmul.f32 %v15_v0, %v15_v0  ;;  %177 = vmatprep.subr.mxu0 %v52_v2  ;;  %v51_v4 = vld [vmem:[%s309_s1 + $0x50] sm:$0xff]  ;;  %v50_v5 = vld [vmem:[%s309_s1 + $0x48] sm:$0xff]  ;;  %v18_v6 = vmul.f32 %v16_v1, %v16_v1  ;;  %v49_v7 = vld [vmem:[%s309_s1 + $0x40] sm:$0xff] }
   0x3   :  { %178 = vmatpush3.msra.mxu0 %v52_v2 }
   0x4   :  { %29 = vrot.lane.b32.xlu1 %v17_v3, %s232_s23  ;;  %179 = vmatprep.subr.mxu0 %v51_v4 }
   0x5   :  { %180 = vmatpush3.msra.mxu0 %v51_v4 }
   0x6   :  { %8 = vsyncpa [#allocation3], 0  ;;  %23 = vrot.lane.b32.xlu0 %v16_v1, %s231_s18  ;;  %181 = vmatprep.subr.mxu0 %v50_v5  ;;  %v48_v8 = vld [vmem:[%s309_s1 + $0x38] sm:$0xff]  ;;  %v47_v9 = vld [vmem:[%s309_s1 + $0x30] sm:$0xff]  ;;  %vm35_vm0 = vcmask 261120   ;;  %vm38_vm1 = vcmask 523264  }
   0x7   :  { %182 = vmatpush3.msra.mxu0 %v50_v5  ;;  %v46_v10 = vld [vmem:[%s309_s1 + $0x28] sm:$0xff]  ;;  %v45_v11 = vld [vmem:[%s309_s1 + $0x20] sm:$0xff]  ;;  %v44_v12 = vld [vmem:[%s309_s1 + $0x18] sm:$0xff]  ;;  %vm60_vm2 = vcmask 785408   ;;  %s233_s15 = smov [#allocation2]  }
   0x8   :  { %31 = vrot.lane.b32.xlu1 %v18_v6, %s232_s23  ;;  %183 = vmatprep.subr.mxu0 %v49_v7  ;;  %v43_v13 = vld [vmem:[%s309_s1 + $0x10] sm:$0xff]  ;;  %v42_v14 = vld [vmem:[%s309_s1 + $0x8] sm:$0xff]  ;;  %v41_v15 = vld [vmem:[%s309_s1] sm:$0xff]  ;;  %s149_s16 = sshll.u32 %s233_s15, 4  ;;  %s150_s16 = int_to_ptr.vmem [resolvable:$true] %s149_s16 }
   0x9   :  { %184 = vmatpush3.msra.mxu0 %v49_v7  ;;  %v160_v24 = vld [vmem:[%s310_s2] ss:$0 sm:$0xff]  ;;  %s209_s17 = scalar_lea.vmem %s150_s16, 256  ;;  %p214_p1 = scmp.lt.s32.totalorder %s150_s16, %s150_s16 }
   0xa   :  { %185 = vmatprep.subr.mxu0 %v48_v8  ;;  %p210_p0 = scmp.ne.s32.totalorder %s150_s16, %s209_s17  ;;  %p215_p2 = scmp.lt.s32.totalorder %s209_s17, %s209_s17 }
   0xb   :  { %186 = vmatpush3.msra.mxu0 %v48_v8 }
   0xc   :  { %187 = vmatprep.subr.mxu0 %v47_v9  ;;  %p216_p3 = por %p215_p2, %p214_p1 }
   0xd   :  { %188 = vmatpush3.msra.mxu0 %v47_v9 }
   0xe   :  { %189 = vmatprep.subr.mxu0 %v46_v10  ;;  %p217_p4 = pnand %p216_p3, %p210_p0 }
   0xf   :  { %190 = vmatpush3.msra.mxu0 %v46_v10 }
  0x10   :  { %191 = vmatprep.subr.mxu0 %v45_v11 }
  0x11   :  { %192 = vmatpush3.msra.mxu0 %v45_v11 }
  0x12   :  { %193 = vmatprep.subr.mxu0 %v44_v12 }
  0x13   :  { %194 = vmatpush3.msra.mxu0 %v44_v12 }
  0x14   :  { %195 = vmatprep.subr.mxu0 %v43_v13 }
  0x15   :  { %196 = vmatpush3.msra.mxu0 %v43_v13 }
  0x16   :  { %197 = vmatprep.subr.mxu0 %v42_v14 }
  0x17   :  { %198 = vmatpush3.msra.mxu0 %v42_v14 }
  0x18   :  { %199 = vmatprep.subr.mxu0 %v41_v15 }
  0x19   :  { %200 = vmatpush3.msra.mxu0 %v41_v15 }
  0x74   :  { %v22_v16 = vpop.permute.xlu0 %21 }
  0x75   :  { %v36_v17 = vsel %vm35_vm0, 1.0, %v22_v16 }
  0x76   :  { %v30_v18 = vpop.permute.xlu1 %29 }
  0x77   :  { %v39_v19 = vsel %vm38_vm1, %v36_v17, %v30_v18 }
  0x78   :  { %201 = vmatprep.mubr.msk.f32.mxu0 %vm60_vm2, %v39_v19  ;;  %v24_v20 = vpop.permute.xlu0 %23 }
  0x79   :  { %v37_v21 = vsel %vm35_vm0, 1.0, %v24_v20 }
  0x7a   :  { %v32_v22 = vpop.permute.xlu1 %31 }
  0x7b   :  { %v40_v23 = vsel %vm38_vm1, %v37_v21, %v32_v22 }
  0x7c   :  { %202 = vmatmul.mubr.msk.f32.vlgmr.msra.gmra.mxu0 %vm60_vm2, %v40_v23 }
 0x13c   :  { %v203_v25 = vpop.f32.mrf.mxu0 }
 0x13d   :  { %v139_v26 = vadd.f32 %v203_v25, %v160_v24 }
 0x13e   :  { %v133_v27 = vpop.f32.mrf.mxu0 }
 0x13f   :  { %143 = vst.msk [vmem:[#allocation2 + $0x8] sm:$0xff] %vm35_vm0, %v139_v26  ;;  %v134_v28 = vadd.f32 %v160_v24, %v133_v27 }
 0x141   :  { %142 = vst.msk [vmem:[#allocation2] sm:$0xff] %vm35_vm0, %v134_v28 }
 0x142   :  { %220 = shalt.err (!%p217_p4)
}
 0x143   :  { %s234_s18 = smov 128   ;;  %s235_s2 = smov 8  }
 0x144   :  { %155 = dma.vmem_to_hbm [thread:$0]  %s150_s16, 256, %s311_s3, [#allocation3], %s234_s18, %s234_s18, %s235_s2  }
 0x145   :  { %229 = dma.done.wait [#allocation3], 256  }
 0x146   :  { %230 = vsyncadd [#allocation3], 4294967040 }
 0x147   :  { %159 = vsyncpa [#allocation3], 1 }

</bundles_post_ra>
